<compile_context>
chip_gen: v7x
topology: tpu7x:2x2x1
jax: 0.10.0
libtpu: 0.0.40
codegen_flags: <defaults>
</compile_context>

<pallas_src>
import jax
import jax.numpy as jnp
from jax.experimental import pallas as pl
from jax.experimental.pallas import tpu as pltpu


def _gelu_new(x):
    # "gelu_new": tanh approximation of GELU (matches HF/transformers gelu_new).
    c = jnp.sqrt(jnp.asarray(2.0 / jnp.pi, dtype=x.dtype))
    return 0.5 * x * (1.0 + jnp.tanh(c * (x + 0.044715 * x * x * x)))


def _adapter_kernel(x_ref, wd_ref, bd_ref, wu_ref, bu_ref, out_ref):
    x = x_ref[...]                                     # (tm, H), input dtype

    # Down projection (precomposed weight): (tm, H) @ (H, D) -> f32 acc.
    z = jnp.dot(x, wd_ref[...], preferred_element_type=jnp.float32)
    z = z + bd_ref[...].astype(jnp.float32)
    z = _gelu_new(z)

    # Up projection (precomposed weight): (tm, D) @ (D, H) -> f32 acc.
    y = jnp.dot(z.astype(wu_ref.dtype), wu_ref[...],
                preferred_element_type=jnp.float32)
    y = y + bu_ref[...].astype(jnp.float32)

    out_ref[...] = y.astype(out_ref.dtype)


def _round_up(x, m):
    return ((x + m - 1) // m) * m


def _vmem_budget_bytes():
    """~3/4 of physical VMEM: ~96 MiB on 128-MiB chips (v5e/v6e), ~48 MiB on v7x."""
    cap = 64 << 20
    try:
        info = pltpu.get_tpu_info()
        cap = int(getattr(info, "vmem_capacity_bytes", cap))
    except Exception:
        pass
    return (cap * 3) // 4


def _cores_per_chip():
    """Best-effort TensorCore count per chip (megacore chips get an even grid)."""
    try:
        kind = jax.devices()[0].device_kind.lower()
    except Exception:
        return 1
    return 2 if ("v7" in kind or "v5p" in kind or "v4" in kind) else 1


@jax.jit
def low_rank_adapter_forward(hiddens, wd_left, wd_right, bd, wu_left, wu_right, bu):
    B, S, H = hiddens.shape
    M = B * S

    # ---- precompose the low-rank factors once (tiny, HIGHEST precision) ----
    hp = jax.lax.Precision.HIGHEST
    wd = jnp.dot(wd_left, wd_right, precision=hp).astype(hiddens.dtype)   # (H, D)
    wu = jnp.dot(wu_left, wu_right, precision=hp).astype(hiddens.dtype)   # (D, H)
    bd32 = bd.astype(jnp.float32)                                         # (1, D)
    bu32 = bu.astype(jnp.float32)                                         # (1, H)
    D = wd.shape[1]
    # TODO(synk): for very large H where 2*H*D resident weights crowd VMEM
    # (v7x 64 MiB), keep the rank-r factors in-kernel instead of precomposing.

    in_itemsize = jnp.dtype(hiddens.dtype).itemsize
    w_itemsize = jnp.dtype(wd.dtype).itemsize
    budget = _vmem_budget_bytes()
    headroom = 2 << 20

    # Resident operands (BlockSpec double-buffers inputs by default).
    weight_bytes = 2 * (H * D + D * H) * w_itemsize + 2 * (D + H) * 4
    # Per-row VMEM: x + out tiles (double-buffered) + f32 intermediates (y, z, gelu tmp).
    per_row = 2 * 2 * H * in_itemsize + H * 4 + 3 * D * 4

    # ---- choose the row tile -------------------------------------------------
    avail = budget - weight_bytes - headroom
    tm_vmem = max(8, (avail // per_row) // 8 * 8) if avail > 8 * per_row else 8
    target_tile_bytes = 4 << 20          # ~4 MiB of x per tile (>=85% HBM roofline)
    tm = max(256, target_tile_bytes // (H * in_itemsize))
    tm = min(tm, tm_vmem)
    tm = min(max(8, (tm // 8) * 8), _round_up(M, 8))

    grid = pl.cdiv(M, tm)

    # Megacore balance: only multi-TC chips split / even out the step count.
    cores = _cores_per_chip()
    if cores > 1:
        if grid == 1 and M >= 8 * cores:
            tm = max(8, _round_up(pl.cdiv(M, cores), 8))
            grid = pl.cdiv(M, tm)
        elif grid > 1 and grid % cores != 0:
            tm = max(8, _round_up(pl.cdiv(M, _round_up(grid, cores)), 8))
            grid = pl.cdiv(M, tm)

    # ---- VMEM limit from the FINAL tile (includes f32 intermediates) ----------
    vmem_need = (2 * 2 * tm * H * in_itemsize          # x + out, double-buffered
                 + weight_bytes                         # resident weights (x2 bufs)
                 + tm * H * 4 + 3 * tm * D * 4          # f32 intermediates
                 + headroom)
    vmem_limit = int(min(budget, max(vmem_need, 32 << 20)))

    # ---- pallas_call: no padding, ragged last block masked by Pallas ----------
    x2d = hiddens.reshape(M, H)
    full = lambda arr: pl.BlockSpec(arr.shape, lambda i: (0,) * arr.ndim)

    out2d = pl.pallas_call(
        _adapter_kernel,
        out_shape=jax.ShapeDtypeStruct((M, H), hiddens.dtype),
        grid_spec=pltpu.PrefetchScalarGridSpec(
            num_scalar_prefetch=0,
            grid=(grid,),
            in_specs=[
                pl.BlockSpec((tm, H), lambda i: (i, 0)),   # x tile (streamed)
                full(wd),                                  # (H, D) resident
                full(bd32),                                # (1, D) resident
                full(wu),                                  # (D, H) resident
                full(bu32),                                # (1, H) resident
            ],
            out_specs=pl.BlockSpec((tm, H), lambda i: (i, 0)),
        ),
        compiler_params=pltpu.CompilerParams(
            dimension_semantics=("parallel",),
            vmem_limit_bytes=vmem_limit),
    )(x2d, wd, bd32, wu, bu32)

    return out2d.reshape(B, S, H)


def _glorot_uniform(key, shape, dtype=jnp.float32):
    fan_in, fan_out = shape[0], shape[1]
    limit = jnp.sqrt(6.0 / (fan_in + fan_out))
    return jax.random.uniform(key, shape, dtype, minval=-limit, maxval=limit)


if __name__ == "__main__":
    # Module hyperparameters (consistent with LowRankAdapterSequentialLayer).
    hidden_dim = 128
    reduction_factor = 32
    low_rank_rank = 8
    down_sample_size = hidden_dim // reduction_factor   # = 4

    # Small deterministic inputs / parameters.
    B, S = 2, 16
    key = jax.random.PRNGKey(0)
    kx, k1, k2, k3, k4 = jax.random.split(key, 5)

    hiddens = jax.random.normal(kx, (B, S, hidden_dim), jnp.float32)

    # Down-sampler LowRankLinear(hidden_dim -> down_sample_size, rank=8)
    wd_left = _glorot_uniform(k1, (hidden_dim, low_rank_rank))
    wd_right = _glorot_uniform(k2, (low_rank_rank, down_sample_size))
    bd = jnp.zeros((1, down_sample_size), jnp.float32)

    # Up-sampler LowRankLinear(down_sample_size -> hidden_dim, rank=8)
    wu_left = _glorot_uniform(k3, (down_sample_size, low_rank_rank))
    wu_right = _glorot_uniform(k4, (low_rank_rank, hidden_dim))
    bu = jnp.zeros((1, hidden_dim), jnp.float32)

    out = low_rank_adapter_forward(hiddens, wd_left, wd_right, bd,
                                   wu_left, wu_right, bu)
    out = jax.block_until_ready(out)

    # Pure-JAX reference for verification (same HIGHEST-precision precompose).
    hp = jax.lax.Precision.HIGHEST
    wd_full = jnp.dot(wd_left, wd_right, precision=hp)
    wu_full = jnp.dot(wu_left, wu_right, precision=hp)
    z_ref = _gelu_new(hiddens @ wd_full + bd[0])
    ref = z_ref @ wu_full + bu[0]

    assert out.shape == (B, S, hidden_dim)
    assert jnp.allclose(out, ref, atol=1e-5, rtol=1e-5), "mismatch vs reference"
    print("KERNEL_OK")
</pallas_src>

<mosaic_0001>
module attributes {stable_mosaic.version = 11 : i64} {
  func.func @_adapter_kernel(%arg0: i32, %arg1: memref<32x128xf32, #tpu.memory_space<vmem>>, %arg2: memref<128x4xf32, #tpu.memory_space<vmem>>, %arg3: memref<1x4xf32, #tpu.memory_space<vmem>>, %arg4: memref<4x128xf32, #tpu.memory_space<vmem>>, %arg5: memref<1x128xf32, #tpu.memory_space<vmem>>, %arg6: memref<32x128xf32, #tpu.memory_space<vmem>>) attributes {dimension_semantics = [#tpu.dimension_semantics<parallel>], iteration_bounds = array<i64: 1>, scalar_prefetch = 0 : i64, scratch_operands = 0 : i64, tpu.core_type = #tpu.core_type<tc>, window_params = [{transform_indices = @transform_0, window_bounds = array<i64: 32, 128>}, {pipeline_mode = #tpu.pipeline_mode<synchronous>, transform_indices = @transform_1, window_bounds = array<i64: 128, 4>}, {pipeline_mode = #tpu.pipeline_mode<synchronous>, transform_indices = @transform_2, window_bounds = array<i64: 1, 4>}, {pipeline_mode = #tpu.pipeline_mode<synchronous>, transform_indices = @transform_3, window_bounds = array<i64: 4, 128>}, {pipeline_mode = #tpu.pipeline_mode<synchronous>, transform_indices = @transform_4, window_bounds = array<i64: 1, 128>}, {transform_indices = @transform_5, window_bounds = array<i64: 32, 128>}]} {
    %c0 = arith.constant 0 : index
    %c0_0 = arith.constant 0 : index
    %0 = vector.load %arg1[%c0, %c0_0] : memref<32x128xf32, #tpu.memory_space<vmem>>, vector<32x128xf32>
    %c0_1 = arith.constant 0 : index
    %c0_2 = arith.constant 0 : index
    %1 = vector.load %arg2[%c0_1, %c0_2] : memref<128x4xf32, #tpu.memory_space<vmem>>, vector<128x4xf32>
    %cst = arith.constant dense<0.000000e+00> : vector<32x4xf32>
    %2 = tpu.matmul %0, %1, %cst {dimension_numbers = #tpu.dot_dimension_numbers<[1], [0], [0], [1], [0, 0, 1, 1], [], []>} : vector<32x128xf32>, vector<128x4xf32>, vector<32x4xf32> -> vector<32x4xf32>
    %c0_3 = arith.constant 0 : index
    %c0_4 = arith.constant 0 : index
    %3 = vector.load %arg3[%c0_3, %c0_4] : memref<1x4xf32, #tpu.memory_space<vmem>>, vector<1x4xf32>
    %4 = vector.broadcast %3 : vector<1x4xf32> to vector<32x4xf32>
    %5 = arith.addf %2, %4 : vector<32x4xf32>
    %cst_5 = arith.constant 0.636619746 : f32
    %6 = math.sqrt %cst_5 : f32
    %cst_6 = arith.constant 5.000000e-01 : f32
    %7 = vector.broadcast %cst_6 : f32 to vector<32x4xf32>
    %8 = arith.mulf %7, %5 : vector<32x4xf32>
    %cst_7 = arith.constant 4.471500e-02 : f32
    %9 = vector.broadcast %cst_7 : f32 to vector<32x4xf32>
    %10 = arith.mulf %9, %5 : vector<32x4xf32>
    %11 = arith.mulf %10, %5 : vector<32x4xf32>
    %12 = arith.mulf %11, %5 : vector<32x4xf32>
    %13 = arith.addf %5, %12 : vector<32x4xf32>
    %14 = vector.broadcast %6 : f32 to vector<32x4xf32>
    %15 = arith.mulf %14, %13 : vector<32x4xf32>
    %16 = math.tanh %15 : vector<32x4xf32>
    %cst_8 = arith.constant 1.000000e+00 : f32
    %17 = vector.broadcast %cst_8 : f32 to vector<32x4xf32>
    %18 = arith.addf %17, %16 : vector<32x4xf32>
    %19 = arith.mulf %8, %18 : vector<32x4xf32>
    %c0_9 = arith.constant 0 : index
    %c0_10 = arith.constant 0 : index
    %20 = vector.load %arg4[%c0_9, %c0_10] : memref<4x128xf32, #tpu.memory_space<vmem>>, vector<4x128xf32>
    %cst_11 = arith.constant dense<0.000000e+00> : vector<32x128xf32>
    %21 = tpu.matmul %19, %20, %cst_11 {dimension_numbers = #tpu.dot_dimension_numbers<[1], [0], [0], [1], [0, 0, 1, 1], [], []>} : vector<32x4xf32>, vector<4x128xf32>, vector<32x128xf32> -> vector<32x128xf32>
    %c0_12 = arith.constant 0 : index
    %c0_13 = arith.constant 0 : index
    %22 = vector.load %arg5[%c0_12, %c0_13] : memref<1x128xf32, #tpu.memory_space<vmem>>, vector<1x128xf32>
    %23 = vector.broadcast %22 : vector<1x128xf32> to vector<32x128xf32>
    %24 = arith.addf %21, %23 : vector<32x128xf32>
    %c0_14 = arith.constant 0 : index
    %c0_15 = arith.constant 0 : index
    %25 = vector.load %arg6[%c0_14, %c0_15] : memref<32x128xf32, #tpu.memory_space<vmem>>, vector<32x128xf32>
    tpu.vector_store %arg6[%c0_14, %c0_15], %24 {strides = array<i32>} : memref<32x128xf32, #tpu.memory_space<vmem>>, vector<32x128xf32>,
    return
  }
  func.func @transform_0(%arg0: i32) -> (i32, i32) {
    %c0_i32 = arith.constant 0 : i32
    %c0_i32_0 = arith.constant 0 : i32
    return %arg0, %c0_i32 : i32, i32
  }
  func.func @transform_1(%arg0: i32) -> (i32, i32) {
    %c0_i32 = arith.constant 0 : i32
    %c0_i32_0 = arith.constant 0 : i32
    %c0_i32_1 = arith.constant 0 : i32
    return %c0_i32, %c0_i32_0 : i32, i32
  }
  func.func @transform_2(%arg0: i32) -> (i32, i32) {
    %c0_i32 = arith.constant 0 : i32
    %c0_i32_0 = arith.constant 0 : i32
    %c0_i32_1 = arith.constant 0 : i32
    return %c0_i32, %c0_i32_0 : i32, i32
  }
  func.func @transform_3(%arg0: i32) -> (i32, i32) {
    %c0_i32 = arith.constant 0 : i32
    %c0_i32_0 = arith.constant 0 : i32
    %c0_i32_1 = arith.constant 0 : i32
    return %c0_i32, %c0_i32_0 : i32, i32
  }
  func.func @transform_4(%arg0: i32) -> (i32, i32) {
    %c0_i32 = arith.constant 0 : i32
    %c0_i32_0 = arith.constant 0 : i32
    %c0_i32_1 = arith.constant 0 : i32
    return %c0_i32, %c0_i32_0 : i32, i32
  }
  func.func @transform_5(%arg0: i32) -> (i32, i32) {
    %c0_i32 = arith.constant 0 : i32
    %c0_i32_0 = arith.constant 0 : i32
    return %arg0, %c0_i32 : i32, i32
  }
}

</mosaic_0001>

<bundles_post_ra>
// kernel: low_rank_adapter_forward.1
= control target key start
LH: loop header
LB: loop body
LE: loop exit
PB: predicated region body
PF: predicated region fallthrough
CT: control target
= control target key end

     0   :  { %s558_s0 = inlined_call_operand.vmem [shape: f32[32,128], index: 0, kind: input, shape index: {}]   ;;  %s559_s1 = inlined_call_operand.vmem [shape: f32[128,4], index: 1, kind: input, shape index: {}]   ;;  %s560_s2 = inlined_call_operand.vmem [shape: f32[1,4], index: 2, kind: input, shape index: {}]   ;;  %s561_s3 = inlined_call_operand.vmem [shape: f32[4,128], index: 3, kind: input, shape index: {}]   ;;  %s562_s4 = inlined_call_operand.vmem [shape: f32[1,128], index: 4, kind: input, shape index: {}]   ;;  %s563_s5 = inlined_call_operand.hbm [shape: f32[32,128], index: 5, kind: output, shape index: {}]  }
   0x1   :  { %v25_v0 = vld [vmem:[%s559_s1] sm:$0xff]  ;;  %v26_v1 = vld [vmem:[%s559_s1 + $0x8] sm:$0xff]  ;;  %v27_v2 = vld [vmem:[%s559_s1 + $0x10] sm:$0xff] }
   0x2   :  { %v377_v3 = vpack.c.bf16 %v26_v1, %v25_v0  ;;  %v28_v4 = vld [vmem:[%s559_s1 + $0x18] sm:$0xff]  ;;  %v29_v6 = vld [vmem:[%s559_s1 + $0x20] sm:$0xff]  ;;  %v30_v7 = vld [vmem:[%s559_s1 + $0x28] sm:$0xff] }
   0x3   :  { %v381_v5 = vpack.c.bf16 %v28_v4, %v27_v2  ;;  %v385_v8 = vpack.c.bf16 %v30_v7, %v29_v6  ;;  %v21_v9 = vld [vmem:[%s558_s0] sm:$0xff]  ;;  %v31_v10 = vld [vmem:[%s559_s1 + $0x30] sm:$0xff]  ;;  %v32_v11 = vld [vmem:[%s559_s1 + $0x38] sm:$0xff] }
   0x4   :  { %378 = vmatprep.subr.bf16.mxu0 %v377_v3  ;;  %363 = vmatprep.mubr.f32.mxu0 %v21_v9 }
   0x5   :  { %380 = vmatpush3.bf16.msra.mxu0 %v377_v3 }
   0x6   :  { %382 = vmatprep.subr.bf16.mxu0 %v381_v5 }
   0x7   :  { %10 = vsyncpa [#allocation3], 0  ;;  %v389_v12 = vpack.c.bf16 %v32_v11, %v31_v10  ;;  %v33_v13 = vld [vmem:[%s559_s1 + $0x40] sm:$0xff]  ;;  %v34_v14 = vld [vmem:[%s559_s1 + $0x48] sm:$0xff]  ;;  %vm190_vm0 = vcmask 1043456   ;;  %vm177_vm1 = vcmask 31744  }
   0x8   :  { %v393_v15 = vpack.c.bf16 %v34_v14, %v33_v13  ;;  %v35_v16 = vld [vmem:[%s559_s1 + $0x50] sm:$0xff]  ;;  %v36_v17 = vld [vmem:[%s559_s1 + $0x58] sm:$0xff]  ;;  %v37_v19 = vld [vmem:[%s559_s1 + $0x60] sm:$0xff] }
   0x9   :  { %384 = vmatpush3.bf16.msra.mxu0 %v381_v5  ;;  %v397_v18 = vpack.c.bf16 %v36_v17, %v35_v16  ;;  %v38_v20 = vld [vmem:[%s559_s1 + $0x68] sm:$0xff]  ;;  %v39_v22 = vld [vmem:[%s559_s1 + $0x70] sm:$0xff]  ;;  %v40_v23 = vld [vmem:[%s559_s1 + $0x78] sm:$0xff] }
   0xa   :  { %386 = vmatprep.subr.bf16.mxu0 %v385_v8  ;;  %v401_v21 = vpack.c.bf16 %v38_v20, %v37_v19  ;;  %v405_v24 = vpack.c.bf16 %v40_v23, %v39_v22  ;;  %v22_v25 = vld [vmem:[%s558_s0 + $0x8] sm:$0xff]  ;;  %v23_v26 = vld [vmem:[%s558_s0 + $0x10] sm:$0xff]  ;;  %v24_v27 = vld [vmem:[%s558_s0 + $0x18] sm:$0xff] }
   0xb   :  { %v169_v28 = vld [vmem:[%s561_s3] sm:$0xf]  ;;  %s444_s3 = smov [#allocation2]  }
   0xc   :  { %369 = vmatprep.subr.msk.mxu1 %vm190_vm0, %v169_v28  ;;  %v299_v29 = vld [vmem:[%s560_s2] ss:$0 sm:$0xff]  ;;  %s288_s11 = sshll.u32 %s444_s3, 4  ;;  %s289_s11 = int_to_ptr.vmem [resolvable:$true] %s288_s11 }
   0xd   :  { %388 = vmatpush3.bf16.msra.mxu0 %v385_v8  ;;  %370 = vmatpush3.msk.msra.mxu1 %vm190_vm0, %v169_v28  ;;  %v300_v10 = vld [vmem:[%s562_s4] ss:$0 sm:$0xff]  ;;  %s420_s12 = scalar_lea.vmem %s289_s11, 512  ;;  %p425_p1 = scmp.lt.s32.totalorder %s289_s11, %s289_s11 }
   0xe   :  { %390 = vmatprep.subr.bf16.mxu0 %v389_v12  ;;  %p421_p0 = scmp.ne.s32.totalorder %s289_s11, %s420_s12  ;;  %p426_p2 = scmp.lt.s32.totalorder %s420_s12, %s420_s12 }
  0x10   :  { %p427_p3 = por %p426_p2, %p425_p1 }
  0x11   :  { %392 = vmatpush3.bf16.msra.mxu0 %v389_v12 }
  0x12   :  { %394 = vmatprep.subr.bf16.mxu0 %v393_v15  ;;  %p428_p4 = pnand %p427_p3, %p421_p0 }
  0x15   :  { %396 = vmatpush3.bf16.msra.mxu0 %v393_v15 }
  0x16   :  { %398 = vmatprep.subr.bf16.mxu0 %v397_v18 }
  0x19   :  { %400 = vmatpush3.bf16.msra.mxu0 %v397_v18 }
  0x1a   :  { %402 = vmatprep.subr.bf16.mxu0 %v401_v21 }
  0x1d   :  { %404 = vmatpush3.bf16.msra.mxu0 %v401_v21 }
  0x1e   :  { %406 = vmatprep.subr.bf16.mxu0 %v405_v24 }
  0x21   :  { %408 = vmatpush3.bf16.msra.mxu0 %v405_v24 }
  0x24   :  { %364 = vmatmul.mubr.f32.vlgmr.msra.gmra.mrb[0].mxu0 %v22_v25 }
  0x25   :  { %366 = vmatprep.mubr.f32.mxu0 %v23_v26 }
  0x28   :  { %367 = vmatmul.mubr.f32.gmra.mrb[2].mxu0 %v24_v27 }
  0xf7   :  { %v365_v30 = vpop.f32.mrb[0].mxu0 }
  0xf8   :  { %v120_v31 = vadd.f32 %v365_v30, %v299_v29  ;;  %v114_v32 = vpop.f32.mrb[1].mxu0 }
  0xf9   :  { %v115_v33 = vadd.f32 %v299_v29, %v114_v32 }
  0xfa   :  { %v138_v34 = vmul.f32 0.044715, %v120_v31  ;;  %v134_v63 = vmul.f32 0.5, %v120_v31 }
  0xfb   :  { %v137_v35 = vmul.f32 0.044715, %v115_v33  ;;  %v368_v36 = vpop.f32.mrb[2].mxu0  ;;  %v133_v61 = vmul.f32 0.5, %v115_v33 }
  0xfc   :  { %v142_v37 = vmul.f32 %v138_v34, %v120_v31  ;;  %v130_v38 = vadd.f32 %v368_v36, %v299_v29  ;;  %v124_v39 = vpop.f32.mrb[3].mxu0 }
  0xfd   :  { %v125_v40 = vadd.f32 %v299_v29, %v124_v39  ;;  %v141_v41 = vmul.f32 %v137_v35, %v115_v33 }
  0xfe   :  { %v146_v42 = vmul.f32 %v142_v37, %v120_v31  ;;  %v140_v43 = vmul.f32 0.044715, %v130_v38  ;;  %v136_v7 = vmul.f32 0.5, %v130_v38 }
  0xff   :  { %v139_v44 = vmul.f32 0.044715, %v125_v40  ;;  %v145_v45 = vmul.f32 %v141_v41, %v115_v33  ;;  %v135_v5 = vmul.f32 0.5, %v125_v40 }
 0x100   :  { %v150_v46 = vadd.f32 %v146_v42, %v120_v31  ;;  %v144_v47 = vmul.f32 %v140_v43, %v130_v38 }
 0x101   :  { %v143_v48 = vmul.f32 %v139_v44, %v125_v40  ;;  %v149_v49 = vadd.f32 %v145_v45, %v115_v33 }
 0x102   :  { %v148_v50 = vmul.f32 %v144_v47, %v130_v38  ;;  %v154_v51 = vmul.f32 0.7978845, %v150_v46 }
 0x103   :  { %v147_v52 = vmul.f32 %v143_v48, %v125_v40  ;;  %v153_v53 = vmul.f32 0.7978845, %v149_v49 }
 0x104   :  { %v152_v54 = vadd.f32 %v148_v50, %v130_v38  ;;  %412 = vtanh.f32 %v154_v51 }
 0x105   :  { %v151_v55 = vadd.f32 %v147_v52, %v125_v40  ;;  %414 = vtanh.f32 %v153_v53 }
 0x106   :  { %v156_v56 = vmul.f32 0.7978845, %v152_v54 }
 0x107   :  { %v155_v57 = vmul.f32 0.7978845, %v151_v55 }
 0x108   :  { %416 = vtanh.f32 %v156_v56 }
 0x109   :  { %418 = vtanh.f32 %v155_v57 }
 0x10e   :  { %v413_v58 = vpop.eup %412 }
 0x10f   :  { %v415_v59 = vpop.eup %414  ;;  %v162_v60 = vadd.f32 1.0, %v413_v58 }
 0x110   :  { %v161_v62 = vadd.f32 1.0, %v415_v59 }
 0x111   :  { %v166_v3 = vmul.f32 %v162_v60, %v134_v63 }
 0x112   :  { %v417_v0 = vpop.eup %416  ;;  %v165_v1 = vmul.f32 %v161_v62, %v133_v61 }
 0x113   :  { %v419_v2 = vpop.eup %418  ;;  %v164_v4 = vadd.f32 1.0, %v417_v0 }
 0x114   :  { %371 = vmatprep.mubr.msk.f32.mxu1 %vm177_vm1, %v165_v1  ;;  %v163_v6 = vadd.f32 1.0, %v419_v2 }
 0x115   :  { %372 = vmatmul.mubr.msk.f32.vlgmr.msra.gmra.mrb[0].mxu1 %vm177_vm1, %v166_v3  ;;  %v168_v9 = vmul.f32 %v164_v4, %v136_v7 }
 0x116   :  { %v167_v8 = vmul.f32 %v163_v6, %v135_v5 }
 0x118   :  { %374 = vmatprep.mubr.msk.f32.mxu1 %vm177_vm1, %v167_v8 }
 0x119   :  { %375 = vmatmul.mubr.msk.f32.gmra.mrb[2].mxu1 %vm177_vm1, %v168_v9 }
 0x1e8   :  { %v373_v11 = vpop.f32.mrb[0].mxu1 }
 0x1e9   :  { %v266_v12 = vadd.f32 %v373_v11, %v300_v10  ;;  %v260_v13 = vpop.f32.mrb[1].mxu1 }
 0x1ea   :  { %v261_v14 = vadd.f32 %v300_v10, %v260_v13 }
 0x1eb   :  { %280 = vst [vmem:[#allocation2 + $0x8] sm:$0xff] %v266_v12 }
 0x1ec   :  { %279 = vst [vmem:[#allocation2] sm:$0xff] %v261_v14  ;;  %v376_v15 = vpop.f32.mrb[2].mxu1 }
 0x1ed   :  { %v276_v16 = vadd.f32 %v376_v15, %v300_v10  ;;  %v270_v17 = vpop.f32.mrb[3].mxu1 }
 0x1ee   :  { %v271_v18 = vadd.f32 %v300_v10, %v270_v17 }
 0x1ef   :  { %282 = vst [vmem:[#allocation2 + $0x18] sm:$0xff] %v276_v16 }
 0x1f0   :  { %281 = vst [vmem:[#allocation2 + $0x10] sm:$0xff] %v271_v18 }
 0x1f1   :  { %431 = shalt.err (!%p428_p4)
}
 0x1f2   :  { %s432_s14 = scalar_lea.hbm %s563_s5, 512 }
 0x1f3   :  { %p433_p5 = scmp.ne.s32.totalorder %s563_s5, %s432_s14  ;;  %p436_p6 = scmp.lt.u32.totalorder %s432_s14, %s563_s5 }
 0x1f5   :  { %p438_p7 = pnand %p436_p6, %p433_p5 }
 0x1f7   :  { %441 = shalt.err (!%p438_p7)
}
 0x1f8   :  { %s445_s19 = smov 128   ;;  %s446_s20 = smov 8  }
 0x1f9   :  { %294 = dma.vmem_to_hbm [thread:$0]  %s289_s11, 512, %s563_s5, [#allocation3], %s445_s19, %s445_s19, %s446_s20  }
 0x1fa   :  { %442 = dma.done.wait [#allocation3], 512  }
 0x1fb   :  { %443 = vsyncadd [#allocation3], 4294966784 }
 0x1fc   :  { %298 = vsyncpa [#allocation3], 1 }

</bundles_post_ra>
